<compile_context>
chip_gen: v7x
topology: tpu7x:2x2x1
jax: 0.10.0
libtpu: 0.0.40
codegen_flags: <defaults>
</compile_context>

<pallas_src>
import functools
import math

import jax
import jax.numpy as jnp
from jax.experimental import pallas as pl
from jax.experimental.pallas import tpu as pltpu


def _lif_kernel(x_ref, o_ref, mem_ref, *, tau, thresh):
    t = pl.program_id(1)

    @pl.when(t == 0)
    def _():
        mem_ref[...] = jnp.zeros_like(mem_ref)

    x = x_ref[...].astype(jnp.float32)
    if tau == 1.0:                                # tau is static: skip the mul
        mem = mem_ref[...] + x
    else:
        mem = mem_ref[...] * tau + x
    fired = mem >= thresh                         # ZIF.forward: (mem - thresh >= 0)
    o_ref[...] = fired.astype(o_ref.dtype)        # spike = heaviside (exactly 0/1)
    mem_ref[...] = jnp.where(fired, 0.0, mem)     # hard reset


def _choose_layout(M, in_itemsize, target_block_bytes):
    """Pick (L, R, R_TILE, M_pad): lane width, rows per step, rows per block, padded M."""
    # Widest lane count whose 8-row slab divides M exactly (no pad, R % 8 == 0).
    L = None
    for cand in (1024, 512, 256, 128):
        if M % (8 * cand) == 0:
            L = cand
            break
    if L is None:
        L = 128                                   # minimal pad, up to one lane row
    M_pad = pl.cdiv(M, L) * L
    R = M_pad // L                                # rows per time step

    rows_per_block = max(8, (target_block_bytes // (L * in_itemsize)) // 8 * 8)
    if R <= 8:
        R_TILE = R                                # full-dim block (tiny inputs)
    else:
        R_TILE = max(8, min(rows_per_block, (R // 8) * 8))
        if R >= 16:
            # Keep the "parallel" row axis at >= 2 tiles so both v7x TCs get work
            # (no-op on single-TC v5e / v6e).
            R_TILE = min(R_TILE, max(8, ((R // 2) // 8) * 8))
    return L, R, R_TILE, M_pad


def lif_spike(x, T, thresh=1.0, tau=1.0, *, out_dtype=None,
              target_block_bytes=2 << 20):
    """LIFSpike.forward (mode='bptt', T > 0). x: (T*B, ...) -> same shape of 0/1 spikes."""
    if T <= 0:
        # TODO(synk): T == 0 branch uses qcfs (clamp + STE floor); not kernelized here.
        raise NotImplementedError("lif_spike kernel implements the T > 0 path")

    orig_shape = x.shape
    assert orig_shape[0] % T == 0, "leading dim must be T * batch"
    out_dtype = x.dtype if out_dtype is None else jnp.dtype(out_dtype)

    M = math.prod(orig_shape) // T                # elements per time step
    in_itemsize = jnp.dtype(x.dtype).itemsize
    out_itemsize = jnp.dtype(out_dtype).itemsize

    L, R, R_TILE, M_pad = _choose_layout(M, in_itemsize, target_block_bytes)

    x2 = x.reshape(T, M)
    if M_pad != M:
        # Rare: only up to the next multiple of L. Padded lanes are independent of
        # real lanes through the elementwise-in-space recurrence and sliced off below.
        x2 = jnp.pad(x2, ((0, 0), (0, M_pad - M)))
    x3 = x2.reshape(T, R, L)

    kernel = functools.partial(_lif_kernel, tau=float(tau), thresh=float(thresh))

    # 2x double-buffered input + 2x double-buffered output + f32 membrane scratch.
    block_vmem_bytes = R_TILE * L * (2 * in_itemsize + 2 * out_itemsize + 4)
    vmem_limit = min(block_vmem_bytes + (8 << 20), 64 << 20)   # fits v7x's 64 MiB/TC

    out = pl.pallas_call(
        kernel,
        out_shape=jax.ShapeDtypeStruct((T, R, L), out_dtype),
        grid_spec=pltpu.PrefetchScalarGridSpec(
            num_scalar_prefetch=0,
            grid=(pl.cdiv(R, R_TILE), T),         # time innermost: sequential recurrence
            in_specs=[
                pl.BlockSpec((pl.Squeezed(), R_TILE, L), lambda i, t: (t, i, 0)),
            ],
            out_specs=pl.BlockSpec((pl.Squeezed(), R_TILE, L), lambda i, t: (t, i, 0)),
            scratch_shapes=[pltpu.VMEM((R_TILE, L), jnp.float32)],  # membrane potential
        ),
        compiler_params=pltpu.CompilerParams(
            dimension_semantics=("parallel", "arbitrary"),
            vmem_limit_bytes=vmem_limit,
        ),
        cost_estimate=pl.CostEstimate(
            flops=4 * T * M,
            transcendentals=0,
            bytes_accessed=T * M * (in_itemsize + out_itemsize),
        ),
    )(x3)

    if M_pad != M:
        out = out.reshape(T, M_pad)[:, :M]
    # TODO(synk): module side-state `self.r = spikes.mean(0)` is not returned here.
    # TODO(synk): forward-only; no custom_vjp for ZIF/Atan/Sig surrogate gradients.
    return out.reshape(orig_shape)


def _lif_ref(x, T, thresh=1.0, tau=1.0):
    """Plain-JAX reference mirroring LIFSpike.forward (bptt path)."""
    B = x.shape[0] // T
    xs = x.reshape((T, B) + x.shape[1:]).astype(jnp.float32)

    def step(mem, xt):
        mem = mem * tau + xt
        spike = (mem - thresh >= 0.0).astype(jnp.float32)
        mem = (1.0 - spike) * mem
        return mem, spike

    _, spikes = jax.lax.scan(step, jnp.zeros_like(xs[0]), xs)
    return spikes.reshape(x.shape).astype(x.dtype)


if __name__ == "__main__":
    key = jax.random.PRNGKey(0)
    T, B, C, H, W = 8, 2, 4, 16, 16               # LIFSpike(T=8) input: (T*B, C, H, W)

    x = jax.random.normal(key, (T * B, C, H, W), dtype=jnp.float32)

    y = jax.block_until_ready(lif_spike(x, T, thresh=1.0, tau=1.0))
    y_ref = _lif_ref(x, T, thresh=1.0, tau=1.0)
    assert y.shape == (T * B, C, H, W) and y.dtype == x.dtype
    assert jnp.array_equal(y, y_ref)

    # Optional low-traffic spike output: 0/1 is exact in bf16 (halves write traffic).
    y_bf16 = jax.block_until_ready(lif_spike(x, T, thresh=1.0, tau=1.0,
                                             out_dtype=jnp.bfloat16))
    assert jnp.array_equal(y_bf16.astype(jnp.float32), y_ref)

    print("KERNEL_OK")
</pallas_src>

<mosaic_0001>
module attributes {stable_mosaic.version = 11 : i64} {
  func.func @_lif_kernel(%arg0: i32, %arg1: i32, %arg2: memref<1x8x256xf32, #tpu.memory_space<vmem>>, %arg3: memref<1x8x256xf32, #tpu.memory_space<vmem>>, %arg4: memref<8x256xf32, #tpu.memory_space<vmem>>) attributes {dimension_semantics = [#tpu.dimension_semantics<parallel>, #tpu.dimension_semantics<arbitrary>], iteration_bounds = array<i64: 1, 8>, scalar_prefetch = 0 : i64, scratch_operands = 1 : i64, tpu.core_type = #tpu.core_type<tc>, window_params = [{transform_indices = @transform_0, window_bounds = array<i64: 1, 8, 256>}, {transform_indices = @transform_1, window_bounds = array<i64: 1, 8, 256>}]} {
    %c0_i32 = arith.constant 0 : i32
    %0 = arith.cmpi eq, %arg1, %c0_i32 : i32
    %1 = arith.extui %0 : i1 to i32
    %c0_i32_0 = arith.constant 0 : i32
    %2 = arith.cmpi ne, %1, %c0_i32_0 : i32
    scf.if %2 {
      %cst_11 = arith.constant 0.000000e+00 : f32
      %17 = vector.broadcast %cst_11 : f32 to vector<8x256xf32>
      %c0_12 = arith.constant 0 : index
      %c0_13 = arith.constant 0 : index
      %18 = vector.load %arg4[%c0_12, %c0_13] : memref<8x256xf32, #tpu.memory_space<vmem>>, vector<8x256xf32>
      tpu.vector_store %arg4[%c0_12, %c0_13], %17 {strides = array<i32>} : memref<8x256xf32, #tpu.memory_space<vmem>>, vector<8x256xf32>,
    } else {
    }
    %c0 = arith.constant 0 : index
    %c0_1 = arith.constant 0 : index
    %c0_2 = arith.constant 0 : index
    %3 = vector.load %arg2[%c0, %c0_1, %c0_2] : memref<1x8x256xf32, #tpu.memory_space<vmem>>, vector<1x8x256xf32>
    %4 = vector.shape_cast %3 : vector<1x8x256xf32> to vector<8x256xf32>
    %c0_3 = arith.constant 0 : index
    %c0_4 = arith.constant 0 : index
    %5 = vector.load %arg4[%c0_3, %c0_4] : memref<8x256xf32, #tpu.memory_space<vmem>>, vector<8x256xf32>
    %6 = arith.addf %5, %4 : vector<8x256xf32>
    %cst = arith.constant 1.000000e+00 : f32
    %7 = vector.broadcast %cst : f32 to vector<8x256xf32>
    %8 = arith.cmpf oge, %6, %7 : vector<8x256xf32>
    %9 = arith.extui %8 : vector<8x256xi1> to vector<8x256xi32>
    %10 = arith.sitofp %9 : vector<8x256xi32> to vector<8x256xf32>
    %c0_5 = arith.constant 0 : index
    %c0_6 = arith.constant 0 : index
    %c0_7 = arith.constant 0 : index
    %11 = vector.load %arg3[%c0_5, %c0_6, %c0_7] : memref<1x8x256xf32, #tpu.memory_space<vmem>>, vector<1x8x256xf32>
    %12 = vector.shape_cast %11 : vector<1x8x256xf32> to vector<8x256xf32>
    %13 = vector.shape_cast %10 : vector<8x256xf32> to vector<1x8x256xf32>
    tpu.vector_store %arg3[%c0_5, %c0_6, %c0_7], %13 {strides = array<i32>} : memref<1x8x256xf32, #tpu.memory_space<vmem>>, vector<1x8x256xf32>,
    %cst_8 = arith.constant 0.000000e+00 : f32
    %14 = vector.broadcast %cst_8 : f32 to vector<8x256xf32>
    %15 = arith.select %8, %14, %6 : vector<8x256xi1>, vector<8x256xf32>
    %c0_9 = arith.constant 0 : index
    %c0_10 = arith.constant 0 : index
    %16 = vector.load %arg4[%c0_9, %c0_10] : memref<8x256xf32, #tpu.memory_space<vmem>>, vector<8x256xf32>
    tpu.vector_store %arg4[%c0_9, %c0_10], %15 {strides = array<i32>} : memref<8x256xf32, #tpu.memory_space<vmem>>, vector<8x256xf32>,
    return
  }
  func.func @transform_0(%arg0: i32, %arg1: i32) -> (i32, i32, i32) {
    %c0_i32 = arith.constant 0 : i32
    %c0_i32_0 = arith.constant 0 : i32
    return %arg1, %arg0, %c0_i32 : i32, i32, i32
  }
  func.func @transform_1(%arg0: i32, %arg1: i32) -> (i32, i32, i32) {
    %c0_i32 = arith.constant 0 : i32
    %c0_i32_0 = arith.constant 0 : i32
    return %arg1, %arg0, %c0_i32 : i32, i32, i32
  }
}

</mosaic_0001>

<bundles_post_ra>
// kernel: tpu_custom_call.1
= control target key start
LH: loop header
LB: loop body
LE: loop exit
PB: predicated region body
PF: predicated region fallthrough
CT: control target
= control target key end

     0   :  { %6 = vsyncpa [#allocation4], 0  ;;  %s659_s0 = inlined_call_operand.hbm [shape: f32[8,8,256], index: 0, kind: input, shape index: {}]   ;;  %s660_s1 = inlined_call_operand.hbm [shape: f32[8,8,256], index: 1, kind: output, shape index: {}]  }
   0x1   :  { %8 = vsyncpa [#allocation4 + $0x1], 0 }
   0x2   :  { %9 = vsyncpa [#allocation5], 0 }
   0x3   :  { %11 = vsyncpa [#allocation5 + $0x1], 0  ;;  %s488_s6 = smov 0   ;;  %s490_s7 = smov 0  }
   0x4   :  { %s492_s8 = smov 0   ;;  %s494_s9 = smov 0  }
   0x5   :  { %s496_s10 = smov 0   ;;  %s498_s11 = smov 0  }
   0x6 LB: > { %s276_s12 = sadd.s32 4294967295, %s472_s11   ;;  %s277_s13 = sadd.s32 4294967294, %s472_s11   ;;  %s472_s11 = sphi %s498_s11, %s17_s11   ;;  %s468_s10 = sphi %s496_s10, %s675_s10   ;;  %s464_s9 = sphi %s494_s9, %s674_s9   ;;  %s460_s8 = sphi %s492_s8, %s673_s8   ;;  %s456_s7 = sphi %s490_s7, %s672_s7   ;;  %s452_s6 = sphi %s488_s6, %s671_s6  }
   0x7   : > { %s26_s14 = sadd.s32 1, %s468_s10  ;;  %s38_s15 = sadd.s32 1, %s460_s8 }
   0x8   : > { %p27_p0 = scmp.ge.s32.totalorder %s26_s14, 8  ;;  %p45_p1 = scmp.ne.s32.totalorder %s460_s8, %s456_s7 }
   0x9   : > { %p46_p2 = scmp.eq.s32.totalorder %s472_s11, 0  ;;  %p51_p3 = scmp.ne.s32.totalorder %s456_s7, %s452_s6 }
   0xa   : > { %s677_s14 = smov (%p27_p0, %s26_s14), 0  ;;  %p52_p5 = scmp.eq.s32.totalorder %s276_s12, 0 }
   0xb   : > { %p529_p4 = por %p46_p2, %p45_p1  ;;  %s33_s17 = ssub.s32 %s468_s10, %s677_s14 }
   0xc   : > { %p77_p6 = scmp.eq.s32.totalorder %s276_s12, 7  ;;  %p36_p7 = scmp.eq.s32.totalorder %s33_s17, 0 }
   0xd   : > { %p535_p8 = por %p52_p5, %p51_p3  ;;  %p83_p10 = scmp.eq.s32.totalorder %s277_s13, 7 }
   0xe   : > { %p539_p9 = por %p77_p6, %p45_p1  ;;  %p308_p12 = scmp.lt.s32.totalorder %s472_s11, 8 }
   0xf   : > { %s544_s20 = scalar_select %p36_p7, %s460_s8, %s38_s15  }
  0x10   : > { %s664_s19 = scalar_select %p539_p9, 1, 0 }
  0x11   : > { %p546_p11 = por %p83_p10, %p51_p3  ;;  %s103_s22 = sand.u32 1, %s460_s8  }
  0x12   : > { %s280_s23 = sshll.u32 %s103_s22, 4  ;;  %s294_s24 = sshll.u32 %s468_s10, 8 }
  0x13   : > { %s665_s21 = scalar_select %p546_p11, 1, 0 }
  0x14   : > { %s556_s27 = scalar_lea.hbm %s659_s0, %s294_s24  ;;  %s107_s28 = scalar_lea.vmem [#allocation3], %s280_s23 }
  0x15   : > { %s117_s29 = sshll.u32 %s107_s28, 4  ;;  %p562_p13 = pnand %p308_p12, %p529_p4  ;;  %s558_s29 = int_to_ptr.vmem [resolvable:$true] %s117_s29 }
  0x16   : > { %s104_s2 = scalar_lea.sflag [#allocation4], %s103_s22  ;;  %s360_s3 = scalar_lea.hbm %s556_s27, 256 }
  0x17   : > { %p361_p2 = scmp.ne.s32.totalorder %s556_s27, %s360_s3  ;;  %p362_p3 = pneg %p562_p13 }
  0x18   : > { %s365_s12 = scalar_lea.hbm %s659_s0, 2048  ;;  %p366_p4 = scmp.lt.u32.totalorder %s556_s27, %s659_s0 }
  0x19   : > { %p363_p5 = pnand %p362_p3, %p361_p2  ;;  %p367_p7 = scmp.lt.u32.totalorder %s365_s12, %s360_s3 }
  0x1a   : > { %p369_p12 = scmp.lt.u32.totalorder %s360_s3, %s556_s27 }
  0x1b   : > { %p364_p6 = pneg %p363_p5  ;;  %p368_p10 = por %p367_p7, %p366_p4 }
  0x1d   : > { %p370_p0 = por %p369_p12, %p368_p10 }
  0x1f   : > { %p371_p1 = pnand %p370_p0, %p364_p6 }
  0x21   : > { %374 = shalt.err (!%p371_p1)
}
  0x22   : > { %s375_s16 = scalar_lea.vmem %s558_s29, 256  ;;  %s474_s17 = smov [#allocation3]  }
  0x23   : > { %p376_p2 = scmp.ne.s32.totalorder %s558_s29, %s375_s16  ;;  %s380_s22 = sshll.u32 %s474_s17, 4  ;;  %s381_s22 = int_to_ptr.vmem [resolvable:$false] %s380_s22 }
  0x24   : > { %s382_s23 = scalar_lea.vmem %s381_s22, 512  ;;  %p383_p9 = scmp.lt.s32.totalorder %s558_s29, %s381_s22 }
  0x25   : > { %p378_p5 = pnand %p376_p2, %p362_p3  ;;  %p384_p4 = scmp.lt.s32.totalorder %s382_s23, %s375_s16 }
  0x27   : > { %p379_p11 = pneg %p378_p5  ;;  %p385_p7 = por %p384_p4, %p383_p9 }
  0x29   : > { %p386_p10 = pnand %p385_p7, %p379_p11 }
  0x2b   : > { %389 = shalt.err (!%p386_p10)
}
  0x2c   : > { %303 = dma.hbm_to_vmem [thread:$0]  (!%p562_p13), %s556_s27, 256, %s558_s29, %s104_s2  }
  0x2d   : > { %p667_p0 = scmp.lt.s32.totalorder %s472_s11, 9  ;;  %p668_p1 = scmp.ge.s32.totalorder %s472_s11, 1 }
  0x2f   : > { %p123_p3 = pnand %p668_p1, %p667_p0 }
  0x30   : > { %s598_s24 = sand.u32 (!%p123_p3), 1, %s456_s7  }
  0x31   : > { %126 = sbr.rel (%p123_p3) target bundleno = 91 (0x5b), region = 24  ;;  %s284_s25 = sshll.u32 (!%p123_p3), %s598_s24, 4 }
  0x32   : > { %s129_s26 = scalar_lea.sflag (!%p123_p3), [#allocation4], %s598_s24  ;;  %s132_s28 = scalar_lea.vmem (!%p123_p3), [#allocation3], %s284_s25 }
  0x38   : > { %443 = dma.done.wait (%p535_p8), %s129_s26, 256  }
  0x39   : > { %445 = vsyncadd (%p535_p8), %s129_s26, 4294967040  ;;  %s150_s30 = scalar_lea.vmem [#allocation6], %s284_s25  ;;  %p286_p9 = scmp.ne.s32.totalorder %s464_s9, 0 }
  0x3a   : > { %v475_v0 = vmov (!%p286_p9), 0.0  }
  0x3b   : > { %154 = sbr.rel (%p286_p9) target bundleno = 66 (0x42), region = 32  ;;  %155 = vst [vmem:[#allocation2] sm:$0xff] (!%p286_p9), %v475_v0  ;;  %156 = vst [vmem:[#allocation2 + $0x8] sm:$0xff] (!%p286_p9), %v475_v0 }
  0x42 PF: > { %v157_v1 = vld [vmem:[%s132_s28] sm:$0xff]  ;;  %v158_v3 = vld [vmem:[%s132_s28 + $0x8] sm:$0xff]  ;;  %s295_s27 = sshll.u32 %s464_s9, 8  ;;  %s192_s29 = sshll.u32 %s150_s30, 4  ;;  %v476_v7 = vmov 0.0   ;;  %s613_s29 = int_to_ptr.vmem [resolvable:$true] %s192_s29 }
  0x43   : > { %v159_v2 = vld [vmem:[#allocation2] sm:$0xff]  ;;  %v160_v5 = vld [vmem:[#allocation2 + $0x8] sm:$0xff]  ;;  %s611_s3 = scalar_lea.hbm %s660_s1, %s295_s27  ;;  %s176_s9 = scalar_lea.sflag [#allocation5], %s598_s24 }
  0x44   : > { %v161_v4 = vadd.f32 %v159_v2, %v157_v1  ;;  %v162_v6 = vadd.f32 %v160_v5, %v158_v3  ;;  %s390_s4 = scalar_lea.vmem %s613_s29, 256  ;;  %p669_p11 = scmp.ne.s32.totalorder %s664_s19, 0 }
  0x45   : > { %p391_p8 = scmp.ne.s32.totalorder %s613_s29, %s390_s4  ;;  %s477_s5 = smov [#allocation6]  }
  0x46   : > { %vm163_vm0 = vcmp.ge.f32.partialorder %v161_v4, 1.0  ;;  %vm164_vm1 = vcmp.ge.f32.partialorder %v162_v6, 1.0  ;;  %s394_s12 = sshll.u32 %s477_s5, 4  ;;  %s395_s12 = int_to_ptr.vmem [resolvable:$false] %s394_s12 }
  0x47   : > { %v287_v8 = vsel %vm163_vm0, 1.0, %v476_v7  ;;  %v171_v9 = vsel %vm163_vm0, 0.0, %v161_v4  ;;  %v288_v10 = vsel %vm164_vm1, 1.0, %v476_v7  ;;  %v172_v11 = vsel %vm164_vm1, 0.0, %v162_v6  ;;  %p392_p13 = pnand %p391_p8, %p669_p11  ;;  %s396_s13 = scalar_lea.vmem %s395_s12, 512 }
  0x48   : > { %169 = vst [vmem:[%s150_s30] sm:$0xff] %v287_v8  ;;  %173 = vst [vmem:[#allocation2] sm:$0xff] %v171_v9  ;;  %p397_p12 = scmp.lt.s32.totalorder %s613_s29, %s395_s12  ;;  %p398_p2 = scmp.lt.s32.totalorder %s396_s13, %s390_s4 }
  0x49   : > { %170 = vst [vmem:[%s150_s30 + $0x8] sm:$0xff] %v288_v10  ;;  %174 = vst [vmem:[#allocation2 + $0x8] sm:$0xff] %v172_v11  ;;  %p393_p6 = pneg %p392_p13 }
  0x4a   : > { %p399_p5 = por %p398_p2, %p397_p12 }
  0x4c   : > { %p400_p4 = pnand %p399_p5, %p393_p6 }
  0x4e   : > { %403 = shalt.err (!%p400_p4)
}
  0x4f   : > { %s404_s15 = scalar_lea.hbm %s611_s3, 256  ;;  %s408_s22 = scalar_lea.hbm %s660_s1, 2048 }
  0x50   : > { %p405_p7 = scmp.ne.s32.totalorder %s611_s3, %s404_s15  ;;  %p409_p1 = scmp.lt.u32.totalorder %s611_s3, %s660_s1 }
  0x51   : > { %p410_p3 = scmp.lt.u32.totalorder %s408_s22, %s404_s15  ;;  %p412_p8 = scmp.lt.u32.totalorder %s404_s15, %s611_s3 }
  0x52   : > { %p406_p10 = pnand %p405_p7, %p669_p11 }
  0x53   : > { %p411_p9 = por %p410_p3, %p409_p1 }
  0x54   : > { %p407_p0 = pneg %p406_p10 }
  0x55   : > { %p413_p13 = por %p412_p8, %p411_p9 }
  0x57   : > { %p414_p6 = pnand %p413_p13, %p407_p0 }
  0x59   : > { %417 = shalt.err (!%p414_p6)
}
  0x5a   : > { %298 = dma.vmem_to_hbm [thread:$0]  (%p669_p11), %s613_s29, 256, %s611_s3, %s176_s9  }
  0x5b PF: > { %p309_p12 = scmp.ge.s32.totalorder %s472_s11, 2  ;;  %s204_s25 = sand.u32 1, %s452_s6  }
  0x5c   : > { %p670_p2 = scmp.ne.s32.totalorder %s665_s21, 0  ;;  %s205_s26 = scalar_lea.sflag [#allocation5], %s204_s25 }
  0x5e   : > { %p305_p5 = pnand %p309_p12, %p670_p2 }
  0x60   : > { %447 = dma.done.wait (!%p305_p5), %s205_s26, 256  }
  0x61   : > { %449 = vsyncadd (!%p305_p5), %s205_s26, 4294967040  ;;  %s17_s11 = sadd.s32 1, %s472_s11   ;;  %s671_s6 = smov %s456_s7 }
  0x62   : > { %p14_p4 = scmp.ge.s32.totalorder %s17_s11, 10   ;;  %s672_s7 = smov %s460_s8 }
  0x63   : > { %s673_s8 = smov %s544_s20  ;;  %s674_s9 = smov %s468_s10 }
  0x64   : > { %s675_s10 = smov %s677_s14  ;;  %16 = sbr.rel (!%p14_p4) target bundleno = 6 (0x6), region = 73 }
  0x6b   :  { %210 = vsyncpa [#allocation4], 1 }
  0x6c   :  { %212 = vsyncpa [#allocation4 + $0x1], 1 }
  0x6d   :  { %213 = vsyncpa [#allocation5], 1 }
  0x6e   :  { %215 = vsyncpa [#allocation5 + $0x1], 1 }

</bundles_post_ra>
